<compile_context>
chip_gen: v6e
topology: v6e:2x2x1
jax: 0.10.0
libtpu: 0.0.40
codegen_flags: <defaults>
</compile_context>

<pallas_src>
import jax
import jax.numpy as jnp
from jax import lax
from jax.experimental import pallas as pl
from jax.experimental.pallas import tpu as pltpu


# ---------------------------------------------------------------------------
# Tiled linear layers:  out = x @ W (+ b)   (bf16 MXU operands, f32 accumulate)
# ---------------------------------------------------------------------------
def _matmul_kernel(x_ref, w_ref, o_ref, acc_ref):
    @pl.when(pl.program_id(2) == 0)
    def _():
        acc_ref[...] = jnp.zeros_like(acc_ref)

    acc_ref[...] += jnp.dot(x_ref[...].astype(jnp.bfloat16),
                            w_ref[...].astype(jnp.bfloat16),
                            preferred_element_type=jnp.float32)

    @pl.when(pl.program_id(2) == pl.num_programs(2) - 1)
    def _():
        o_ref[...] = acc_ref[...].astype(o_ref.dtype)


def _matmul_bias_kernel(x_ref, w_ref, b_ref, o_ref, acc_ref):
    @pl.when(pl.program_id(2) == 0)
    def _():
        acc_ref[...] = jnp.zeros_like(acc_ref)

    acc_ref[...] += jnp.dot(x_ref[...].astype(jnp.bfloat16),
                            w_ref[...].astype(jnp.bfloat16),
                            preferred_element_type=jnp.float32)

    @pl.when(pl.program_id(2) == pl.num_programs(2) - 1)
    def _():
        o_ref[...] = (acc_ref[...] + b_ref[...]).astype(o_ref.dtype)


def _pick_tile(dim, cap, align):
    """Largest divisor of `dim` that is <= cap and a multiple of `align`.

    Falls back to the full dim (always a legal block) only when no such
    divisor exists (e.g. M = B*N with a prime factorisation that has no
    aligned divisor).  This avoids the old silent "one enormous tile" path.
    """
    if dim <= cap:
        return dim
    for t in range(cap, align - 1, -1):
        if dim % t == 0 and t % align == 0:
            return t
    return dim  # TODO(synk): pad + masked tail instead of a full-dim tile.


def _clamp_vmem(nbytes):
    return int(min(max(nbytes, 32 * 1024 * 1024), 100 * 1024 * 1024))


def linear_pallas(x2d, w, bias=None, *, tm_cap=256, tn_cap=256, tk_cap=512):
    M, K = x2d.shape
    _, Nout = w.shape
    tm = _pick_tile(M, tm_cap, 8)      # sublane-aligned
    tn = _pick_tile(Nout, tn_cap, 128)  # lane-aligned
    tk = _pick_tile(K, tk_cap, 128)     # lane-aligned (x block's minor dim)
    grid = (M // tm, Nout // tn, K // tk)

    x_spec = pl.BlockSpec((tm, tk), lambda i, j, k: (i, k))
    w_spec = pl.BlockSpec((tk, tn), lambda i, j, k: (k, j))
    o_spec = pl.BlockSpec((tm, tn), lambda i, j, k: (i, j))
    scratch = [pltpu.VMEM((tm, tn), jnp.float32)]

    vmem_need = 2 * 4 * (tm * tk + tk * tn + tm * tn) + 4 * tm * tn + 2 * 4 * tn
    cparams = pltpu.CompilerParams(
        dimension_semantics=("parallel", "parallel", "arbitrary"),
        vmem_limit_bytes=_clamp_vmem(2 * vmem_need))
    cost = pl.CostEstimate(flops=2 * M * Nout * K, transcendentals=0,
                           bytes_accessed=4 * (M * K + K * Nout + M * Nout))

    if bias is None:
        return pl.pallas_call(
            _matmul_kernel,
            out_shape=jax.ShapeDtypeStruct((M, Nout), x2d.dtype),
            grid=grid,
            in_specs=[x_spec, w_spec],
            out_specs=o_spec,
            scratch_shapes=scratch,
            compiler_params=cparams,
            cost_estimate=cost,
        )(x2d, w)

    b_spec = pl.BlockSpec((1, tn), lambda i, j, k: (0, j))
    return pl.pallas_call(
        _matmul_bias_kernel,
        out_shape=jax.ShapeDtypeStruct((M, Nout), x2d.dtype),
        grid=grid,
        in_specs=[x_spec, w_spec, b_spec],
        out_specs=o_spec,
        scratch_shapes=scratch,
        compiler_params=cparams,
        cost_estimate=cost,
    )(x2d, w, bias.reshape(1, Nout))


# ---------------------------------------------------------------------------
# Rel-pos table (wrapper side, tiny gather/transpose glue), shape ((H+W)*hd, N)
#   rows [0, H*hd)        : rel_table[qh*hd + c, kh*W + kw] = Rh[qh, kh, c]
#   rows [H*hd, (H+W)*hd) : rel_table[H*hd + qw*hd + c, kh*W + kw] = Rw[qw, kw, c]
# ---------------------------------------------------------------------------
def _build_rel_table(rel_pos_h, rel_pos_w, H, W, hd, dtype=jnp.bfloat16):
    dist_h = jnp.arange(H)[:, None] - jnp.arange(H)[None, :] + (H - 1)
    dist_w = jnp.arange(W)[:, None] - jnp.arange(W)[None, :] + (W - 1)
    Rh = rel_pos_h[dist_h]                       # (H, H, hd)  [qh, kh, c]
    Rw = rel_pos_w[dist_w]                       # (W, W, hd)  [qw, kw, c]
    rh = jnp.broadcast_to(jnp.transpose(Rh, (0, 2, 1))[:, :, :, None],
                          (H, hd, H, W)).reshape(H * hd, H * W)
    rw = jnp.tile(jnp.transpose(Rw, (0, 2, 1)).reshape(W * hd, W), (1, H))
    return jnp.concatenate([rh, rw], axis=0).astype(dtype)


# ---------------------------------------------------------------------------
# Attention core: one batch element per grid step; all heads processed
# in-kernel; output written as a lane-dense (N, all_head_dim) slab.
# ---------------------------------------------------------------------------
def attention_core_pallas(qkv, rel_table, *, num_heads, H, W, head_dim, scale):
    B, N, all3 = qkv.shape
    A = all3 // 3
    hd = head_dim
    k_tab = (H + W) * hd

    def kernel(qkv_ref, tab_ref, o_ref):
        tab = tab_ref[...]                                   # ((H+W)*hd, N) bf16

        # Rel-pos selection mask, shared by all heads.  Cheap VPU iota/compare
        # generated in-kernel (no HBM input); hoisted out of the head loop.
        g = lax.broadcasted_iota(jnp.int32, (N, k_tab), 1) // hd   # group idx
        r = lax.broadcasted_iota(jnp.int32, (N, k_tab), 0)         # query token
        sel = jnp.where(g < H, (r // W) == g, (r % W) == (g - H))  # bool

        for h in range(num_heads):                           # static, small
            # Static lane slices straight off the VMEM ref (no big slab load).
            q = (qkv_ref[0, :, h * hd:(h + 1) * hd] * scale).astype(jnp.bfloat16)
            k = qkv_ref[0, :, A + h * hd:A + (h + 1) * hd].astype(jnp.bfloat16)
            v = qkv_ref[0, :, 2 * A + h * hd:2 * A + (h + 1) * hd].astype(jnp.bfloat16)

            # q @ k^T on the MXU (bf16 in, f32 accumulate), no materialized k^T.
            attn = lax.dot_general(q, k, (((1,), (1,)), ((), ())),
                                   preferred_element_type=jnp.float32)  # (N, N)

            # Decomposed rel-pos bias (height + width) as ONE wide-K matmul:
            # lane-replicate q into the (H+W) groups, zero out the groups that
            # do not match this query's (qh, qw), multiply by the table.
            q_rep = jnp.concatenate([q] * (H + W), axis=1)          # (N, (H+W)*hd)
            q_mask = jnp.where(sel, q_rep, jnp.zeros_like(q_rep))
            attn = attn + jnp.dot(q_mask, tab,
                                  preferred_element_type=jnp.float32)

            # Numerically stable softmax in f32 (v5e-safe); divide -> EUP recip.
            attn = attn - jnp.max(attn, axis=-1, keepdims=True)
            p = jnp.exp(attn)
            denom = jnp.sum(p, axis=-1, keepdims=True)
            p = p * pl.reciprocal(denom, approx=True)
            # attn_drop is identity (p = 0.0)

            out_h = jnp.dot(p.astype(jnp.bfloat16), v,
                            preferred_element_type=jnp.float32)      # (N, hd)
            # Immediate per-head store into its lane slice (bounds live set).
            o_ref[0, :, h * hd:(h + 1) * hd] = out_h.astype(o_ref.dtype)

    # Explicit scoped-VMEM budget: resident blocks + a few heads' temporaries.
    resident = 2 * N * all3 * 4 + 2 * k_tab * N * 2 + 2 * N * A * 4
    per_head = (3 * N * hd * 2 + 2 * N * k_tab * 2 + N * k_tab
                + 3 * N * N * 4 + N * N * 2 + N * hd * 4)
    vmem_limit = _clamp_vmem(2 * (resident + 3 * per_head))

    cost = pl.CostEstimate(
        flops=2 * B * num_heads * N * N * (2 * hd + k_tab),
        transcendentals=B * num_heads * N * N,
        bytes_accessed=B * (N * all3 * 4 + N * A * 4) + k_tab * N * 2)

    return pl.pallas_call(
        kernel,
        out_shape=jax.ShapeDtypeStruct((B, N, A), qkv.dtype),
        grid=(B,),
        in_specs=[
            pl.BlockSpec((1, N, all3), lambda b: (b, 0, 0)),
            pl.BlockSpec((k_tab, N), lambda b: (0, 0)),
        ],
        out_specs=pl.BlockSpec((1, N, A), lambda b: (b, 0, 0)),
        compiler_params=pltpu.CompilerParams(
            dimension_semantics=("parallel",),
            vmem_limit_bytes=vmem_limit),
        cost_estimate=cost,
    )(qkv, rel_table)


# ---------------------------------------------------------------------------
# Full forward pass of the Attention module.
# ---------------------------------------------------------------------------
def attention_forward(x, params, H, W, num_heads):
    B, N, C = x.shape
    w_qkv = params["w_qkv"]          # (C, 3*all_head_dim)   qkv_bias=False
    w_proj = params["w_proj"]        # (all_head_dim, C)
    b_proj = params["b_proj"]        # (C,)

    all3 = w_qkv.shape[1]
    A = all3 // 3
    hd = A // num_heads
    scale = hd ** (-0.5)

    # QKV projection (no bias), kept in the native (., 3A) column layout:
    # columns are [q_h0..q_h{nh-1} | k_h0.. | v_h0..], each head hd wide.
    qkv = linear_pallas(x.reshape(B * N, C), w_qkv, bias=None)
    qkv = qkv.reshape(B, N, all3)

    rel_table = _build_rel_table(params["rel_pos_h"], params["rel_pos_w"],
                                 H, W, hd)

    out = attention_core_pallas(qkv, rel_table, num_heads=num_heads,
                                H=H, W=W, head_dim=hd, scale=scale)  # (B,N,A)

    out = linear_pallas(out.reshape(B * N, A), w_proj, bias=b_proj)
    # proj_drop is identity (p = 0.0)
    return out.reshape(B, N, C)


# ---------------------------------------------------------------------------
# Pure-JAX reference (mirrors the PyTorch forward) for a sanity check.
# ---------------------------------------------------------------------------
def reference_forward(x, params, H, W, num_heads):
    B, N, C = x.shape
    all_head_dim = params["w_proj"].shape[0]
    hd = all_head_dim // num_heads
    scale = hd ** (-0.5)
    qkv = x @ params["w_qkv"]
    qkv = qkv.reshape(B, N, 3, num_heads, hd).transpose(2, 0, 3, 1, 4)
    q, k, v = qkv[0] * scale, qkv[1], qkv[2]
    attn = q @ jnp.swapaxes(k, -2, -1)
    dist_h = jnp.arange(H)[:, None] - jnp.arange(H)[None, :] + (H - 1)
    dist_w = jnp.arange(W)[:, None] - jnp.arange(W)[None, :] + (W - 1)
    Rh = params["rel_pos_h"][dist_h]
    Rw = params["rel_pos_w"][dist_w]
    r_q = q.reshape(B, num_heads, H, W, hd)
    rel_h = jnp.einsum("byhwc,hkc->byhwk", r_q, Rh)
    rel_w = jnp.einsum("byhwc,wkc->byhwk", r_q, Rw)
    attn = (attn.reshape(B, num_heads, H, W, H, W)
            + rel_h[:, :, :, :, :, None]
            + rel_w[:, :, :, :, None, :]).reshape(B, num_heads, N, N)
    attn = jax.nn.softmax(attn, axis=-1)
    out = jnp.swapaxes(attn @ v, 1, 2).reshape(B, N, all_head_dim)
    return out @ params["w_proj"] + params["b_proj"]


if __name__ == "__main__":
    B, H, W = 2, 4, 4
    dim, num_heads = 32, 4
    N = H * W
    hd = dim // num_heads
    all_head_dim = hd * num_heads

    key = jax.random.PRNGKey(0)
    kx, k1, k2, k3, k4, k5 = jax.random.split(key, 6)
    x = jax.random.normal(kx, (B, N, dim), jnp.float32)
    # PyTorch inits rel_pos to zeros; use small random values so the rel-pos
    # path is actually exercised.
    params = {
        "w_qkv": 0.05 * jax.random.normal(k1, (dim, 3 * all_head_dim), jnp.float32),
        "w_proj": 0.05 * jax.random.normal(k2, (all_head_dim, dim), jnp.float32),
        "b_proj": 0.05 * jax.random.normal(k3, (dim,), jnp.float32),
        "rel_pos_h": 0.05 * jax.random.normal(k4, (2 * H - 1, hd), jnp.float32),
        "rel_pos_w": 0.05 * jax.random.normal(k5, (2 * W - 1, hd), jnp.float32),
    }

    out = attention_forward(x, params, H, W, num_heads)
    out = jax.block_until_ready(out)

    ref = reference_forward(x, params, H, W, num_heads)
    assert out.shape == (B, N, dim)
    err = float(jnp.max(jnp.abs(out - ref)))
    # bf16-fed MXU (f32 accumulate) -> tolerance loosened vs. a pure-f32 path.
    assert jnp.allclose(out, ref, atol=2e-2, rtol=2e-2), err
    print("KERNEL_OK")
</pallas_src>

<mosaic_0001>
module attributes {stable_mosaic.version = 11 : i64} {
  func.func @_matmul_kernel(%arg0: i32, %arg1: i32, %arg2: i32, %arg3: memref<32x32xf32, #tpu.memory_space<vmem>>, %arg4: memref<32x96xf32, #tpu.memory_space<vmem>>, %arg5: memref<32x96xf32, #tpu.memory_space<vmem>>, %arg6: memref<32x96xf32, #tpu.memory_space<vmem>>) attributes {dimension_semantics = [#tpu.dimension_semantics<parallel>, #tpu.dimension_semantics<parallel>, #tpu.dimension_semantics<arbitrary>], iteration_bounds = array<i64: 1, 1, 1>, scalar_prefetch = 0 : i64, scratch_operands = 1 : i64, tpu.core_type = #tpu.core_type<tc>, window_params = [{transform_indices = @transform_0, window_bounds = array<i64: 32, 32>}, {transform_indices = @transform_1, window_bounds = array<i64: 32, 96>}, {transform_indices = @transform_2, window_bounds = array<i64: 32, 96>}]} {
    %c0_i32 = arith.constant 0 : i32
    %0 = arith.cmpi eq, %arg2, %c0_i32 : i32
    %1 = arith.extui %0 : i1 to i32
    %c0_i32_0 = arith.constant 0 : i32
    %2 = arith.cmpi ne, %1, %c0_i32_0 : i32
    scf.if %2 {
      %cst_10 = arith.constant 0.000000e+00 : f32
      %14 = vector.broadcast %cst_10 : f32 to vector<32x96xf32>
      %c0_11 = arith.constant 0 : index
      %c0_12 = arith.constant 0 : index
      %15 = vector.load %arg6[%c0_11, %c0_12] : memref<32x96xf32, #tpu.memory_space<vmem>>, vector<32x96xf32>
      tpu.vector_store %arg6[%c0_11, %c0_12], %14 {strides = array<i32>} : memref<32x96xf32, #tpu.memory_space<vmem>>, vector<32x96xf32>,
    } else {
    }
    %c0 = arith.constant 0 : index
    %c0_1 = arith.constant 0 : index
    %3 = vector.load %arg6[%c0, %c0_1] : memref<32x96xf32, #tpu.memory_space<vmem>>, vector<32x96xf32>
    %c0_2 = arith.constant 0 : index
    %c0_3 = arith.constant 0 : index
    %4 = vector.load %arg3[%c0_2, %c0_3] : memref<32x32xf32, #tpu.memory_space<vmem>>, vector<32x32xf32>
    %5 = arith.truncf %4 : vector<32x32xf32> to vector<32x32xbf16>
    %c0_4 = arith.constant 0 : index
    %c0_5 = arith.constant 0 : index
    %6 = vector.load %arg4[%c0_4, %c0_5] : memref<32x96xf32, #tpu.memory_space<vmem>>, vector<32x96xf32>
    %7 = arith.truncf %6 : vector<32x96xf32> to vector<32x96xbf16>
    %cst = arith.constant dense<0.000000e+00> : vector<32x96xf32>
    %8 = tpu.matmul %5, %7, %cst {dimension_numbers = #tpu.dot_dimension_numbers<[1], [0], [0], [1], [0, 0, 1, 1], [], []>} : vector<32x32xbf16>, vector<32x96xbf16>, vector<32x96xf32> -> vector<32x96xf32>
    %9 = arith.addf %3, %8 : vector<32x96xf32>
    %c0_6 = arith.constant 0 : index
    %c0_7 = arith.constant 0 : index
    %10 = vector.load %arg6[%c0_6, %c0_7] : memref<32x96xf32, #tpu.memory_space<vmem>>, vector<32x96xf32>
    tpu.vector_store %arg6[%c0_6, %c0_7], %9 {strides = array<i32>} : memref<32x96xf32, #tpu.memory_space<vmem>>, vector<32x96xf32>,
    %c0_i32_8 = arith.constant 0 : i32
    %11 = arith.cmpi eq, %arg2, %c0_i32_8 : i32
    %12 = arith.extui %11 : i1 to i32
    %c0_i32_9 = arith.constant 0 : i32
    %13 = arith.cmpi ne, %12, %c0_i32_9 : i32
    scf.if %13 {
      %c0_10 = arith.constant 0 : index
      %c0_11 = arith.constant 0 : index
      %14 = vector.load %arg6[%c0_10, %c0_11] : memref<32x96xf32, #tpu.memory_space<vmem>>, vector<32x96xf32>
      %c0_12 = arith.constant 0 : index
      %c0_13 = arith.constant 0 : index
      %15 = vector.load %arg5[%c0_12, %c0_13] : memref<32x96xf32, #tpu.memory_space<vmem>>, vector<32x96xf32>
      tpu.vector_store %arg5[%c0_12, %c0_13], %14 {strides = array<i32>} : memref<32x96xf32, #tpu.memory_space<vmem>>, vector<32x96xf32>,
    } else {
    }
    return
  }
  func.func @transform_0(%arg0: i32, %arg1: i32, %arg2: i32) -> (i32, i32) {
    %c0_i32 = arith.constant 0 : i32
    return %arg0, %arg2 : i32, i32
  }
  func.func @transform_1(%arg0: i32, %arg1: i32, %arg2: i32) -> (i32, i32) {
    %c0_i32 = arith.constant 0 : i32
    return %arg2, %arg1 : i32, i32
  }
  func.func @transform_2(%arg0: i32, %arg1: i32, %arg2: i32) -> (i32, i32) {
    %c0_i32 = arith.constant 0 : i32
    return %arg0, %arg1 : i32, i32
  }
}

</mosaic_0001>

<bundles_post_ra>
// kernel: tpu_custom_call.1
= control target key start
LH: loop header
LB: loop body
LE: loop exit
PB: predicated region body
PF: predicated region fallthrough
CT: control target
= control target key end

     0   :  { %7 = vsyncpa [#allocation4], 0  ;;  %s297_s0 = inlined_call_operand.hbm [shape: f32[32,32], index: 0, kind: input, shape index: {}]   ;;  %s298_s1 = inlined_call_operand.hbm [shape: f32[32,96], index: 1, kind: input, shape index: {}]   ;;  %s299_s2 = inlined_call_operand.hbm [shape: f32[32,96], index: 2, kind: output, shape index: {}]  }
   0x1   :  { %8 = vsyncpa [#allocation7], 0 }
   0x2   :  { %9 = vsyncpa [#allocation5], 0  ;;  %s246_s9 = smov [#allocation3]  }
   0x3   :  { %s15_s10 = sshll.u32 %s246_s9, 4  ;;  %s16_s10 = int_to_ptr.vmem [resolvable:$true] %s15_s10 }
   0x4   :  { %s188_s11 = scalar_lea.vmem %s16_s10, 512  ;;  %p193_p1 = scmp.lt.s32.totalorder %s16_s10, %s16_s10 }
   0x5   :  { %p189_p0 = scmp.ne.s32.totalorder %s16_s10, %s188_s11  ;;  %p194_p2 = scmp.lt.s32.totalorder %s188_s11, %s188_s11 }
   0x7   :  { %p195_p3 = por %p194_p2, %p193_p1 }
   0x9   :  { %p196_p4 = pnand %p195_p3, %p189_p0 }
   0xb   :  { %199 = shalt.err (!%p196_p4)
}
   0xc   :  { %s247_s12 = smov 128   ;;  %s248_s13 = smov 8  }
   0xd   :  { %21 = dma.hbm_to_vmem [thread:$0]  %s297_s0, 512, %s16_s10, [#allocation4], %s247_s12, %s247_s12, %s248_s13  }
   0xe   :  { %s249_s16 = smov [#allocation6]  }
   0xf   :  { %s27_s17 = sshll.u32 %s249_s16, 4  ;;  %s28_s17 = int_to_ptr.vmem [resolvable:$true] %s27_s17 }
  0x10   :  { %s208_s18 = scalar_lea.vmem %s28_s17, 512  ;;  %p213_p6 = scmp.lt.s32.totalorder %s28_s17, %s28_s17 }
  0x11   :  { %p209_p5 = scmp.ne.s32.totalorder %s28_s17, %s208_s18  ;;  %p214_p7 = scmp.lt.s32.totalorder %s208_s18, %s208_s18 }
  0x13   :  { %p215_p8 = por %p214_p7, %p213_p6 }
  0x15   :  { %p216_p9 = pnand %p215_p8, %p209_p5 }
  0x17   :  { %219 = shalt.err (!%p216_p9)
}
  0x18   :  { %33 = dma.hbm_to_vmem [thread:$0]  %s298_s1, 512, %s28_s17, [#allocation7], %s247_s12, %s247_s12, %s248_s13  }
  0x19   :  { %240 = dma.done.wait [#allocation4], 512  }
  0x1a   :  { %241 = vsyncadd [#allocation4], 4294966784 }
  0x1b   :  { %242 = dma.done.wait [#allocation7], 512  }
  0x1c   :  { %243 = vsyncadd [#allocation7], 4294966784  ;;  %vm45_vm0 = vcmask 785408   ;;  %v250_v0 = vmov 0.0   ;;  %v62_v1 = vld [vmem:[#allocation6 + $0x10] sm:$0xff]  ;;  %v63_v2 = vld [vmem:[#allocation6 + $0x18] sm:$0xff] }
  0x1d   :  { %48 = vst.msk [vmem:[#allocation2 + $0x10] sm:$0xff] %vm45_vm0, %v250_v0  ;;  %46 = vst.msk [vmem:[#allocation2] sm:$0xff] %vm45_vm0, %v250_v0  ;;  %v60_v3 = vld [vmem:[#allocation6] sm:$0xff]  ;;  %v65_v4 = vpack.c.bf16 %v63_v2, %v62_v1  ;;  %v61_v5 = vld [vmem:[#allocation6 + $0x8] sm:$0xff]  ;;  %vm66_vm1 = vcmask 261120   ;;  %s251_s0 = smov [#allocation8]  }
  0x1e   :  { %47 = vst.msk [vmem:[#allocation2 + $0x8] sm:$0xff] %vm45_vm0, %v250_v0  ;;  %49 = vst.msk [vmem:[#allocation2 + $0x18] sm:$0xff] %vm45_vm0, %v250_v0  ;;  %v54_v6 = vld [vmem:[#allocation3] sm:$0xff]  ;;  %v55_v7 = vld [vmem:[#allocation3 + $0x8] sm:$0xff]  ;;  %v64_v8 = vpack.c.bf16 %v61_v5, %v60_v3  ;;  %s147_s1 = sshll.u32 %s251_s0, 4  ;;  %s148_s1 = int_to_ptr.vmem [resolvable:$true] %s147_s1 }
  0x1f   :  { %v58_v9 = vpack.c.bf16 %v55_v7, %v54_v6  ;;  %166 = vmatprep.subr.bf16.mxu0 %v65_v4  ;;  %v56_v10 = vld [vmem:[#allocation3 + $0x10] sm:$0xff]  ;;  %v57_v11 = vld [vmem:[#allocation3 + $0x18] sm:$0xff]  ;;  %s220_s21 = scalar_lea.vmem %s148_s1, 512  ;;  %p225_p11 = scmp.lt.s32.totalorder %s148_s1, %s148_s1 }
  0x20   :  { %167 = vmatpush3.bf16.msra.mxu0 %v65_v4  ;;  %v59_v12 = vpack.c.bf16 %v57_v11, %v56_v10  ;;  %p221_p10 = scmp.ne.s32.totalorder %s148_s1, %s220_s21  ;;  %p226_p12 = scmp.lt.s32.totalorder %s220_s21, %s220_s21 }
  0x21   :  { %170 = vmatprep.mubr.msk.bf16.mxu0 %vm66_vm1, %v58_v9  ;;  %168 = vmatprep.subr.bf16.mxu0 %v64_v8 }
  0x22   :  { %p227_p13 = por %p226_p12, %p225_p11 }
  0x24   :  { %169 = vmatpush3.bf16.msra.mxu0 %v64_v8  ;;  %v52_v13 = vld [vmem:[#allocation2 + $0x10] sm:$0xff]  ;;  %v50_v15 = vld [vmem:[#allocation2] sm:$0xff]  ;;  %p228_p0 = pnand %p227_p13, %p221_p10 }
  0x25   :  { %v53_v18 = vld [vmem:[#allocation2 + $0x18] sm:$0xff]  ;;  %v51_v21 = vld [vmem:[#allocation2 + $0x8] sm:$0xff] }
  0x27   :  { %171 = vmatmul.mubr.msk.bf16.vlgmr.msra.gmra.mxu0 %vm66_vm1, %v59_v12 }
  0xe7   :  { %v172_v14 = vpop.f32.mrf.mxu0 }
  0xe8   :  { %v124_v16 = vadd.f32 %v172_v14, %v52_v13 }
  0xe9   :  { %v107_v17 = vpop.f32.mrf.mxu0 }
  0xea   :  { %129 = vst.msk [vmem:[#allocation2 + $0x10] sm:$0xff] %vm45_vm0, %v124_v16  ;;  %v122_v19 = vadd.f32 %v107_v17, %v50_v15 }
  0xeb   :  { %v173_v20 = vpop.f32.mrf.mxu0 }
  0xec   :  { %127 = vst.msk [vmem:[#allocation2] sm:$0xff] %vm45_vm0, %v122_v19  ;;  %v125_v22 = vadd.f32 %v173_v20, %v53_v18 }
  0xed   :  { %v110_v23 = vpop.f32.mrf.mxu0 }
  0xee   :  { %130 = vst.msk [vmem:[#allocation2 + $0x18] sm:$0xff] %vm45_vm0, %v125_v22  ;;  %v123_v24 = vadd.f32 %v110_v23, %v51_v21 }
  0xf0   :  { %128 = vst.msk [vmem:[#allocation2 + $0x8] sm:$0xff] %vm45_vm0, %v123_v24 }
  0xf1   :  { %v136_v25 = vld [vmem:[#allocation2 + $0x10] sm:$0xff] }
  0xf2   :  { %140 = vst.msk [vmem:[#allocation8 + $0x10] sm:$0xff] %vm45_vm0, %v136_v25 }
  0xf3   :  { %v134_v26 = vld [vmem:[#allocation2] sm:$0xff] }
  0xf4   :  { %138 = vst.msk [vmem:[#allocation8] sm:$0xff] %vm45_vm0, %v134_v26 }
  0xf5   :  { %v137_v27 = vld [vmem:[#allocation2 + $0x18] sm:$0xff] }
  0xf6   :  { %141 = vst.msk [vmem:[#allocation8 + $0x18] sm:$0xff] %vm45_vm0, %v137_v27 }
  0xf7   :  { %v135_v28 = vld [vmem:[#allocation2 + $0x8] sm:$0xff] }
  0xf8   :  { %139 = vst.msk [vmem:[#allocation8 + $0x8] sm:$0xff] %vm45_vm0, %v135_v28 }
  0xf9   :  { %231 = shalt.err (!%p228_p0)
}
  0xfa   :  { %153 = dma.vmem_to_hbm [thread:$0]  %s148_s1, 512, %s299_s2, [#allocation5], %s247_s12, %s247_s12, %s248_s13  }
  0xfb   :  { %244 = dma.done.wait [#allocation5], 512  }
  0xfc   :  { %245 = vsyncadd [#allocation5], 4294966784 }
  0xfd   :  { %157 = vsyncpa [#allocation4], 1 }
  0xfe   :  { %158 = vsyncpa [#allocation7], 1 }
  0xff   :  { %159 = vsyncpa [#allocation5], 1 }

</bundles_post_ra>
